<compile_context>
chip_gen: v5e
topology: v5e:2x2
jax: 0.10.0
libtpu: 0.0.40
codegen_flags: <defaults>
</compile_context>

<pallas_src>
import functools

import jax
import jax.numpy as jnp
from jax import lax
from jax.experimental import pallas as pl
from jax.experimental.pallas import tpu as pltpu

DIM = 2
CONNECTIVITY = 4
MIN_THICK = 1
INTERACTIONS = ((True, 1, 2), (False, 2, 3))


def _ti_loss_kernel(x_ref, y_ref, o_ref, *, num_classes, height, width,
                    pad_h, pad_w):
    # x_ref: (1, C, Hp, Wp) f32 logits;  y_ref: (1, 1, Hp, Wp) i8 labels
    labels = y_ref[0, 0].astype(jnp.int32)                  # (Hp, Wp)

    zero = jnp.zeros((pad_h, pad_w), jnp.float32)

    # Validity of the real image region (top-left (H, W) corner).  Only needed
    # for masks that are not automatically zero in the pad ring (the inclusion
    # complement mask, and any mask comparing against label 0).
    row = lax.broadcasted_iota(jnp.int32, (pad_h, pad_w), 0)
    col = lax.broadcasted_iota(jnp.int32, (pad_h, pad_w), 1)
    valid = (row < height) & (col < width)

    def neighbourhood(m):
        # 'same' conv of a binary mask with the 3x3 cross kernel, as a 5-tap
        # shift-add (rolls go to the XLU slot, adds to the VPU).  Returns RAW
        # counts (0..5): the >=1 binarization is deliberately dropped because
        # the downstream `count*binary_mask + count*binary_mask >= 1` test is
        # unchanged for non-negative integer counts.  Do NOT reuse this helper
        # with a weighted (non 0/1) kernel.
        # The circular rolls need no border selects: the wrapper guarantees at
        # least one zero pad row and column, and every mask fed in here is
        # zero inside the pad ring, so wrapped values are always zero.
        return (m
                + pltpu.roll(m, shift=1, axis=0)            # up neighbour
                + pltpu.roll(m, shift=pad_h - 1, axis=0)    # down neighbour
                + pltpu.roll(m, shift=1, axis=1)            # left neighbour
                + pltpu.roll(m, shift=pad_w - 1, axis=1))   # right neighbour

    # ---- pass 1 over classes: running max + argmax (lowest index on ties) --
    if num_classes <= 8:
        mx = x_ref[0, 0]                                     # (Hp, Wp) f32
        P = jnp.zeros((pad_h, pad_w), jnp.int32)
        for c in range(1, num_classes):
            xc = x_ref[0, c]
            upd = xc > mx
            P = jnp.where(upd, c, P)
            mx = jnp.where(upd, xc, mx)
    else:
        def body1(c, carry):
            mx_c, P_c = carry
            xc = x_ref[0, c]
            upd = xc > mx_c
            return jnp.where(upd, xc, mx_c), jnp.where(upd, c, P_c)
        mx, P = lax.fori_loop(
            1, num_classes, body1,
            (x_ref[0, 0], jnp.zeros((pad_h, pad_w), jnp.int32)))

    # ---- topological interaction module: critical pixels map --------------
    # Hoist the P == label compares once and reuse them across interactions.
    labels_used = sorted({l for (_, a, c) in INTERACTIONS for l in (a, c)})
    eq = {l: (P == l) for l in labels_used}

    def class_mask(label):
        pred = eq[label]
        if label == 0:
            # P == 0 also holds in the (all-zero-logit) pad ring -> mask it.
            pred = pred & valid
        return jnp.where(pred, 1.0, 0.0)

    crit_cnt = zero
    for (is_inclusion, label_a, label_c) in INTERACTIONS:
        mask_a = class_mask(label_a)
        if is_inclusion:
            # NOT (P == C  OR  P == A), ANDed with validity so the zero pad
            # ring stays zero (one fused where, no extra select).
            mask_c = jnp.where(eq[label_c] | eq[label_a] | (~valid), 0.0, 1.0)
        else:
            mask_c = class_mask(label_c)
        crit_cnt = jnp.maximum(
            crit_cnt,
            neighbourhood(mask_c) * mask_a + neighbourhood(mask_a) * mask_c)
    # Single binarization: max(s1, s2) >= 1  <=>  (s1 >= 1) OR (s2 >= 1).
    critical = jnp.where(crit_cnt >= 1.0, 1.0, 0.0)

    # ---- pass 2 over classes: per-pixel CE = mx + log(sum exp(x-mx)) - x[y]
    # (The argmax term contributes exactly exp(0)=1, but since the argmax class
    # varies per pixel its whole-plane exp cannot actually be skipped; EUP has
    # plenty of slack here anyway.)
    if num_classes <= 8:
        sum_exp = zero
        picked = zero
        for c in range(num_classes):
            xc = x_ref[0, c]
            sum_exp = sum_exp + jnp.exp(xc - mx)
            picked = picked + jnp.where(labels == c, xc, 0.0)
    else:
        def body2(c, carry):
            se, pk = carry
            xc = x_ref[0, c]
            return (se + jnp.exp(xc - mx),
                    pk + jnp.where(labels == c, xc, 0.0))
        sum_exp, picked = lax.fori_loop(0, num_classes, body2, (zero, zero))
    ce = mx + jnp.log(sum_exp) - picked                      # (Hp, Wp)

    # ---- masked CE, summed over the image (per-batch scalar) ---------------
    # No explicit validity multiply: critical is identically zero in the pad
    # ring (every mask is zero there), so pad pixels contribute nothing.
    weighted = ce * critical
    s = jnp.sum(weighted, axis=1, keepdims=True)             # (Hp, 1)
    s = jnp.sum(s, axis=0, keepdims=True)                    # (1, 1)
    o_ref[...] = s.reshape(1, 1, 1)


def _round_up(v, m):
    return (v + m - 1) // m * m


def ti_loss(x, y):
    """x: (B, C, H, W) f32 logits;  y: (B, 1, H, W) int labels in [0, C)."""
    assert DIM == 2 and CONNECTIVITY == 4
    B, C, H, W = x.shape
    # Guarantee >=1 zero pad row & column (lets the stencil drop all border
    # selects).  Sublane dim rounded to 32 so the int8 label plane is natively
    # tiled; lane dim to 128 so rolls/stores are lane-dense.
    Hp = _round_up(H + 1, 32)
    Wp = _round_up(W + 1, 128)
    x = jnp.pad(x, ((0, 0), (0, 0), (0, Hp - H), (0, Wp - W)))
    y = jnp.pad(y.astype(jnp.int8), ((0, 0), (0, 0), (0, Hp - H), (0, Wp - W)))

    # Generation-aware VMEM budget: double-buffered inputs (C f32 planes + one
    # i8 label plane) + ~12 live (Hp, Wp) f32 temporaries + slack, capped at
    # ~75% of the physical VMEM of this chip.
    plane = Hp * Wp * 4
    try:
        vmem_cap = int(pltpu.get_tpu_info().vmem_capacity_bytes)
    except Exception:
        vmem_cap = 64 << 20  # conservative: v7x per-TC physical
    need = 2 * (C * plane + Hp * Wp) + 12 * plane + (2 << 20)
    vmem_limit = int(min(max(need, 16 << 20), (vmem_cap * 3) // 4))

    cost = pl.CostEstimate(
        flops=int(100 * B * Hp * Wp),
        transcendentals=int((C + 1) * B * Hp * Wp),
        bytes_accessed=int(B * Hp * Wp * (4 * C + 1) + 4 * B),
    )

    kernel = functools.partial(_ti_loss_kernel, num_classes=C, height=H,
                               width=W, pad_h=Hp, pad_w=Wp)
    per_batch = pl.pallas_call(
        kernel,
        out_shape=jax.ShapeDtypeStruct((B, 1, 1), jnp.float32),
        grid_spec=pltpu.PrefetchScalarGridSpec(
            num_scalar_prefetch=0,
            grid=(B,),
            in_specs=[
                pl.BlockSpec((1, C, Hp, Wp), lambda b: (b, 0, 0, 0)),
                pl.BlockSpec((1, 1, Hp, Wp), lambda b: (b, 0, 0, 0)),
            ],
            out_specs=pl.BlockSpec((1, 1, 1), lambda b: (b, 0, 0)),
        ),
        compiler_params=pltpu.CompilerParams(
            dimension_semantics=("parallel",),
            vmem_limit_bytes=vmem_limit,
        ),
        cost_estimate=cost,
    )(x, y)
    # sum over dims [1, 2, 3] already done per batch; mean over batch (glue)
    return jnp.mean(per_batch[:, 0, 0])


# ---------------- pure-JAX reference (independent of the kernel) ----------------
def _reference_loss(x, y):
    B, C, H, W = x.shape
    P = jnp.argmax(jax.nn.softmax(x, axis=1), axis=1)       # (B, H, W)
    cross = jnp.array([[0., 1., 0.], [1., 1., 1.], [0., 1., 0.]], jnp.float32)
    kern = cross.reshape(1, 1, 3, 3)

    def conv(m):  # m: (B, 1, H, W)
        return lax.conv_general_dilated(
            m, kern, (1, 1), padding=((1, 1), (1, 1)),
            dimension_numbers=("NCHW", "OIHW", "NCHW"))

    critical = jnp.zeros((B, 1, H, W), jnp.float32)
    for (is_inclusion, a, c) in INTERACTIONS:
        mask_a = (P == a).astype(jnp.float32)[:, None]
        if is_inclusion:
            mask_c = jnp.where((P == c) | (P == a), 0.0, 1.0)[:, None]
        else:
            mask_c = (P == c).astype(jnp.float32)[:, None]
        nbr_c = (conv(mask_c) >= 1.0).astype(jnp.float32)
        nbr_a = (conv(mask_a) >= 1.0).astype(jnp.float32)
        viol = (nbr_c * mask_a + nbr_a * mask_c >= 1.0).astype(jnp.float32)
        critical = jnp.maximum(critical, viol)

    logp = jax.nn.log_softmax(x, axis=1)
    ce = -jnp.take_along_axis(logp, y.astype(jnp.int32), axis=1)[:, 0]  # (B,H,W)
    weighted = ce * critical[:, 0]
    return jnp.mean(jnp.sum(weighted, axis=(1, 2)))


if __name__ == "__main__":
    key = jax.random.PRNGKey(0)
    kx, ky = jax.random.split(key)
    B, C, H, W = 2, 4, 16, 16
    x = jax.random.normal(kx, (B, C, H, W), dtype=jnp.float32)
    y = jax.random.randint(ky, (B, 1, H, W), 0, C, dtype=jnp.int32)

    loss = jax.block_until_ready(ti_loss(x, y))
    ref = jax.block_until_ready(_reference_loss(x, y))
    assert jnp.allclose(loss, ref, rtol=1e-4, atol=1e-4), (float(loss), float(ref))
    print("KERNEL_OK")
</pallas_src>

<mosaic_0001>
module attributes {stable_mosaic.version = 11 : i64} {
  func.func @_ti_loss_kernel(%arg0: i32, %arg1: memref<1x4x32x128xf32, #tpu.memory_space<vmem>>, %arg2: memref<1x1x32x128xi8, #tpu.memory_space<vmem>>, %arg3: memref<1x1x1xf32, #tpu.memory_space<vmem>>) attributes {dimension_semantics = [#tpu.dimension_semantics<parallel>], iteration_bounds = array<i64: 2>, scalar_prefetch = 0 : i64, scratch_operands = 0 : i64, tpu.core_type = #tpu.core_type<tc>, window_params = [{transform_indices = @transform_0, window_bounds = array<i64: 1, 4, 32, 128>}, {transform_indices = @transform_1, window_bounds = array<i64: 1, 1, 32, 128>}, {transform_indices = @transform_2, window_bounds = array<i64: 1, 1, 1>}]} {
    %c0 = arith.constant 0 : index
    %c0_0 = arith.constant 0 : index
    %c0_1 = arith.constant 0 : index
    %c0_2 = arith.constant 0 : index
    %0 = vector.load %arg2[%c0, %c0_0, %c0_1, %c0_2] : memref<1x1x32x128xi8, #tpu.memory_space<vmem>>, vector<1x1x32x128xi8>
    %1 = vector.shape_cast %0 : vector<1x1x32x128xi8> to vector<32x128xi8>
    %2 = arith.extsi %1 : vector<32x128xi8> to vector<32x128xi32>
    %cst = arith.constant 0.000000e+00 : f32
    %3 = vector.broadcast %cst : f32 to vector<32x128xf32>
    %4 = tpu.iota {dimensions = array<i32: 0>} : vector<32x128xi32>
    %5 = tpu.iota {dimensions = array<i32: 1>} : vector<32x128xi32>
    %c16_i32 = arith.constant 16 : i32
    %6 = vector.broadcast %c16_i32 : i32 to vector<32x128xi32>
    %7 = arith.cmpi slt, %4, %6 : vector<32x128xi32>
    %c16_i32_3 = arith.constant 16 : i32
    %8 = vector.broadcast %c16_i32_3 : i32 to vector<32x128xi32>
    %9 = arith.cmpi slt, %5, %8 : vector<32x128xi32>
    %10 = arith.andi %7, %9 : vector<32x128xi1>
    %c0_4 = arith.constant 0 : index
    %c0_5 = arith.constant 0 : index
    %c0_6 = arith.constant 0 : index
    %c0_7 = arith.constant 0 : index
    %11 = vector.load %arg1[%c0_4, %c0_5, %c0_6, %c0_7] : memref<1x4x32x128xf32, #tpu.memory_space<vmem>>, vector<1x1x32x128xf32>
    %12 = vector.shape_cast %11 : vector<1x1x32x128xf32> to vector<32x128xf32>
    %c0_i32 = arith.constant 0 : i32
    %13 = vector.broadcast %c0_i32 : i32 to vector<32x128xi32>
    %c0_8 = arith.constant 0 : index
    %c1 = arith.constant 1 : index
    %c0_9 = arith.constant 0 : index
    %c0_10 = arith.constant 0 : index
    %14 = vector.load %arg1[%c0_8, %c1, %c0_9, %c0_10] : memref<1x4x32x128xf32, #tpu.memory_space<vmem>>, vector<1x1x32x128xf32>
    %15 = vector.shape_cast %14 : vector<1x1x32x128xf32> to vector<32x128xf32>
    %16 = arith.cmpf ogt, %15, %12 : vector<32x128xf32>
    %c1_i32 = arith.constant 1 : i32
    %17 = vector.broadcast %c1_i32 : i32 to vector<32x128xi32>
    %18 = arith.select %16, %17, %13 : vector<32x128xi1>, vector<32x128xi32>
    %19 = arith.select %16, %15, %12 : vector<32x128xi1>, vector<32x128xf32>
    %c0_11 = arith.constant 0 : index
    %c2 = arith.constant 2 : index
    %c0_12 = arith.constant 0 : index
    %c0_13 = arith.constant 0 : index
    %20 = vector.load %arg1[%c0_11, %c2, %c0_12, %c0_13] : memref<1x4x32x128xf32, #tpu.memory_space<vmem>>, vector<1x1x32x128xf32>
    %21 = vector.shape_cast %20 : vector<1x1x32x128xf32> to vector<32x128xf32>
    %22 = arith.cmpf ogt, %21, %19 : vector<32x128xf32>
    %c2_i32 = arith.constant 2 : i32
    %23 = vector.broadcast %c2_i32 : i32 to vector<32x128xi32>
    %24 = arith.select %22, %23, %18 : vector<32x128xi1>, vector<32x128xi32>
    %25 = arith.select %22, %21, %19 : vector<32x128xi1>, vector<32x128xf32>
    %c0_14 = arith.constant 0 : index
    %c3 = arith.constant 3 : index
    %c0_15 = arith.constant 0 : index
    %c0_16 = arith.constant 0 : index
    %26 = vector.load %arg1[%c0_14, %c3, %c0_15, %c0_16] : memref<1x4x32x128xf32, #tpu.memory_space<vmem>>, vector<1x1x32x128xf32>
    %27 = vector.shape_cast %26 : vector<1x1x32x128xf32> to vector<32x128xf32>
    %28 = arith.cmpf ogt, %27, %25 : vector<32x128xf32>
    %c3_i32 = arith.constant 3 : i32
    %29 = vector.broadcast %c3_i32 : i32 to vector<32x128xi32>
    %30 = arith.select %28, %29, %24 : vector<32x128xi1>, vector<32x128xi32>
    %31 = arith.select %28, %27, %25 : vector<32x128xi1>, vector<32x128xf32>
    %c1_i32_17 = arith.constant 1 : i32
    %32 = vector.broadcast %c1_i32_17 : i32 to vector<32x128xi32>
    %33 = arith.cmpi eq, %30, %32 : vector<32x128xi32>
    %c2_i32_18 = arith.constant 2 : i32
    %34 = vector.broadcast %c2_i32_18 : i32 to vector<32x128xi32>
    %35 = arith.cmpi eq, %30, %34 : vector<32x128xi32>
    %c3_i32_19 = arith.constant 3 : i32
    %36 = vector.broadcast %c3_i32_19 : i32 to vector<32x128xi32>
    %37 = arith.cmpi eq, %30, %36 : vector<32x128xi32>
    %cst_20 = arith.constant 1.000000e+00 : f32
    %cst_21 = arith.constant 0.000000e+00 : f32
    %38 = vector.broadcast %cst_20 : f32 to vector<32x128xf32>
    %39 = vector.broadcast %cst_21 : f32 to vector<32x128xf32>
    %40 = arith.select %33, %38, %39 : vector<32x128xi1>, vector<32x128xf32>
    %41 = arith.ori %35, %33 : vector<32x128xi1>
    %cst_22 = arith.constant dense<true> : vector<32x128xi1>
    %42 = arith.xori %10, %cst_22 : vector<32x128xi1>
    %43 = arith.ori %41, %42 : vector<32x128xi1>
    %cst_23 = arith.constant 0.000000e+00 : f32
    %cst_24 = arith.constant 1.000000e+00 : f32
    %44 = vector.broadcast %cst_23 : f32 to vector<32x128xf32>
    %45 = vector.broadcast %cst_24 : f32 to vector<32x128xf32>
    %46 = arith.select %43, %44, %45 : vector<32x128xi1>, vector<32x128xf32>
    %c1_i32_25 = arith.constant 1 : i32
    %47 = tpu.dynamic_rotate %46 by %c1_i32_25 dim 0 : vector<32x128xf32>, i32 -> vector<32x128xf32>
    %48 = arith.addf %46, %47 : vector<32x128xf32>
    %c31_i32 = arith.constant 31 : i32
    %49 = tpu.dynamic_rotate %46 by %c31_i32 dim 0 : vector<32x128xf32>, i32 -> vector<32x128xf32>
    %50 = arith.addf %48, %49 : vector<32x128xf32>
    %c1_i32_26 = arith.constant 1 : i32
    %51 = tpu.dynamic_rotate %46 by %c1_i32_26 dim 1 : vector<32x128xf32>, i32 -> vector<32x128xf32>
    %52 = arith.addf %50, %51 : vector<32x128xf32>
    %c127_i32 = arith.constant 127 : i32
    %53 = tpu.dynamic_rotate %46 by %c127_i32 dim 1 : vector<32x128xf32>, i32 -> vector<32x128xf32>
    %54 = arith.addf %52, %53 : vector<32x128xf32>
    %55 = arith.mulf %54, %40 : vector<32x128xf32>
    %c1_i32_27 = arith.constant 1 : i32
    %56 = tpu.dynamic_rotate %40 by %c1_i32_27 dim 0 : vector<32x128xf32>, i32 -> vector<32x128xf32>
    %57 = arith.addf %40, %56 : vector<32x128xf32>
    %c31_i32_28 = arith.constant 31 : i32
    %58 = tpu.dynamic_rotate %40 by %c31_i32_28 dim 0 : vector<32x128xf32>, i32 -> vector<32x128xf32>
    %59 = arith.addf %57, %58 : vector<32x128xf32>
    %c1_i32_29 = arith.constant 1 : i32
    %60 = tpu.dynamic_rotate %40 by %c1_i32_29 dim 1 : vector<32x128xf32>, i32 -> vector<32x128xf32>
    %61 = arith.addf %59, %60 : vector<32x128xf32>
    %c127_i32_30 = arith.constant 127 : i32
    %62 = tpu.dynamic_rotate %40 by %c127_i32_30 dim 1 : vector<32x128xf32>, i32 -> vector<32x128xf32>
    %63 = arith.addf %61, %62 : vector<32x128xf32>
    %64 = arith.mulf %63, %46 : vector<32x128xf32>
    %65 = arith.addf %55, %64 : vector<32x128xf32>
    %66 = arith.maximumf %3, %65 : vector<32x128xf32>
    %cst_31 = arith.constant 1.000000e+00 : f32
    %cst_32 = arith.constant 0.000000e+00 : f32
    %67 = vector.broadcast %cst_31 : f32 to vector<32x128xf32>
    %68 = vector.broadcast %cst_32 : f32 to vector<32x128xf32>
    %69 = arith.select %35, %67, %68 : vector<32x128xi1>, vector<32x128xf32>
    %cst_33 = arith.constant 1.000000e+00 : f32
    %cst_34 = arith.constant 0.000000e+00 : f32
    %70 = vector.broadcast %cst_33 : f32 to vector<32x128xf32>
    %71 = vector.broadcast %cst_34 : f32 to vector<32x128xf32>
    %72 = arith.select %37, %70, %71 : vector<32x128xi1>, vector<32x128xf32>
    %c1_i32_35 = arith.constant 1 : i32
    %73 = tpu.dynamic_rotate %72 by %c1_i32_35 dim 0 : vector<32x128xf32>, i32 -> vector<32x128xf32>
    %74 = arith.addf %72, %73 : vector<32x128xf32>
    %c31_i32_36 = arith.constant 31 : i32
    %75 = tpu.dynamic_rotate %72 by %c31_i32_36 dim 0 : vector<32x128xf32>, i32 -> vector<32x128xf32>
    %76 = arith.addf %74, %75 : vector<32x128xf32>
    %c1_i32_37 = arith.constant 1 : i32
    %77 = tpu.dynamic_rotate %72 by %c1_i32_37 dim 1 : vector<32x128xf32>, i32 -> vector<32x128xf32>
    %78 = arith.addf %76, %77 : vector<32x128xf32>
    %c127_i32_38 = arith.constant 127 : i32
    %79 = tpu.dynamic_rotate %72 by %c127_i32_38 dim 1 : vector<32x128xf32>, i32 -> vector<32x128xf32>
    %80 = arith.addf %78, %79 : vector<32x128xf32>
    %81 = arith.mulf %80, %69 : vector<32x128xf32>
    %c1_i32_39 = arith.constant 1 : i32
    %82 = tpu.dynamic_rotate %69 by %c1_i32_39 dim 0 : vector<32x128xf32>, i32 -> vector<32x128xf32>
    %83 = arith.addf %69, %82 : vector<32x128xf32>
    %c31_i32_40 = arith.constant 31 : i32
    %84 = tpu.dynamic_rotate %69 by %c31_i32_40 dim 0 : vector<32x128xf32>, i32 -> vector<32x128xf32>
    %85 = arith.addf %83, %84 : vector<32x128xf32>
    %c1_i32_41 = arith.constant 1 : i32
    %86 = tpu.dynamic_rotate %69 by %c1_i32_41 dim 1 : vector<32x128xf32>, i32 -> vector<32x128xf32>
    %87 = arith.addf %85, %86 : vector<32x128xf32>
    %c127_i32_42 = arith.constant 127 : i32
    %88 = tpu.dynamic_rotate %69 by %c127_i32_42 dim 1 : vector<32x128xf32>, i32 -> vector<32x128xf32>
    %89 = arith.addf %87, %88 : vector<32x128xf32>
    %90 = arith.mulf %89, %72 : vector<32x128xf32>
    %91 = arith.addf %81, %90 : vector<32x128xf32>
    %92 = arith.maximumf %66, %91 : vector<32x128xf32>
    %cst_43 = arith.constant 1.000000e+00 : f32
    %93 = vector.broadcast %cst_43 : f32 to vector<32x128xf32>
    %94 = arith.cmpf oge, %92, %93 : vector<32x128xf32>
    %cst_44 = arith.constant 1.000000e+00 : f32
    %cst_45 = arith.constant 0.000000e+00 : f32
    %95 = vector.broadcast %cst_44 : f32 to vector<32x128xf32>
    %96 = vector.broadcast %cst_45 : f32 to vector<32x128xf32>
    %97 = arith.select %94, %95, %96 : vector<32x128xi1>, vector<32x128xf32>
    %c0_46 = arith.constant 0 : index
    %c0_47 = arith.constant 0 : index
    %c0_48 = arith.constant 0 : index
    %c0_49 = arith.constant 0 : index
    %98 = vector.load %arg1[%c0_46, %c0_47, %c0_48, %c0_49] : memref<1x4x32x128xf32, #tpu.memory_space<vmem>>, vector<1x1x32x128xf32>
    %99 = vector.shape_cast %98 : vector<1x1x32x128xf32> to vector<32x128xf32>
    %100 = arith.subf %99, %31 : vector<32x128xf32>
    %101 = math.exp %100 : vector<32x128xf32>
    %102 = arith.addf %3, %101 : vector<32x128xf32>
    %c0_i32_50 = arith.constant 0 : i32
    %103 = vector.broadcast %c0_i32_50 : i32 to vector<32x128xi32>
    %104 = arith.cmpi eq, %2, %103 : vector<32x128xi32>
    %cst_51 = arith.constant 0.000000e+00 : f32
    %105 = vector.broadcast %cst_51 : f32 to vector<32x128xf32>
    %106 = arith.select %104, %99, %105 : vector<32x128xi1>, vector<32x128xf32>
    %107 = arith.addf %3, %106 : vector<32x128xf32>
    %c0_52 = arith.constant 0 : index
    %c1_53 = arith.constant 1 : index
    %c0_54 = arith.constant 0 : index
    %c0_55 = arith.constant 0 : index
    %108 = vector.load %arg1[%c0_52, %c1_53, %c0_54, %c0_55] : memref<1x4x32x128xf32, #tpu.memory_space<vmem>>, vector<1x1x32x128xf32>
    %109 = vector.shape_cast %108 : vector<1x1x32x128xf32> to vector<32x128xf32>
    %110 = arith.subf %109, %31 : vector<32x128xf32>
    %111 = math.exp %110 : vector<32x128xf32>
    %112 = arith.addf %102, %111 : vector<32x128xf32>
    %c1_i32_56 = arith.constant 1 : i32
    %113 = vector.broadcast %c1_i32_56 : i32 to vector<32x128xi32>
    %114 = arith.cmpi eq, %2, %113 : vector<32x128xi32>
    %cst_57 = arith.constant 0.000000e+00 : f32
    %115 = vector.broadcast %cst_57 : f32 to vector<32x128xf32>
    %116 = arith.select %114, %109, %115 : vector<32x128xi1>, vector<32x128xf32>
    %117 = arith.addf %107, %116 : vector<32x128xf32>
    %c0_58 = arith.constant 0 : index
    %c2_59 = arith.constant 2 : index
    %c0_60 = arith.constant 0 : index
    %c0_61 = arith.constant 0 : index
    %118 = vector.load %arg1[%c0_58, %c2_59, %c0_60, %c0_61] : memref<1x4x32x128xf32, #tpu.memory_space<vmem>>, vector<1x1x32x128xf32>
    %119 = vector.shape_cast %118 : vector<1x1x32x128xf32> to vector<32x128xf32>
    %120 = arith.subf %119, %31 : vector<32x128xf32>
    %121 = math.exp %120 : vector<32x128xf32>
    %122 = arith.addf %112, %121 : vector<32x128xf32>
    %c2_i32_62 = arith.constant 2 : i32
    %123 = vector.broadcast %c2_i32_62 : i32 to vector<32x128xi32>
    %124 = arith.cmpi eq, %2, %123 : vector<32x128xi32>
    %cst_63 = arith.constant 0.000000e+00 : f32
    %125 = vector.broadcast %cst_63 : f32 to vector<32x128xf32>
    %126 = arith.select %124, %119, %125 : vector<32x128xi1>, vector<32x128xf32>
    %127 = arith.addf %117, %126 : vector<32x128xf32>
    %c0_64 = arith.constant 0 : index
    %c3_65 = arith.constant 3 : index
    %c0_66 = arith.constant 0 : index
    %c0_67 = arith.constant 0 : index
    %128 = vector.load %arg1[%c0_64, %c3_65, %c0_66, %c0_67] : memref<1x4x32x128xf32, #tpu.memory_space<vmem>>, vector<1x1x32x128xf32>
    %129 = vector.shape_cast %128 : vector<1x1x32x128xf32> to vector<32x128xf32>
    %130 = arith.subf %129, %31 : vector<32x128xf32>
    %131 = math.exp %130 : vector<32x128xf32>
    %132 = arith.addf %122, %131 : vector<32x128xf32>
    %c3_i32_68 = arith.constant 3 : i32
    %133 = vector.broadcast %c3_i32_68 : i32 to vector<32x128xi32>
    %134 = arith.cmpi eq, %2, %133 : vector<32x128xi32>
    %cst_69 = arith.constant 0.000000e+00 : f32
    %135 = vector.broadcast %cst_69 : f32 to vector<32x128xf32>
    %136 = arith.select %134, %129, %135 : vector<32x128xi1>, vector<32x128xf32>
    %137 = arith.addf %127, %136 : vector<32x128xf32>
    %138 = math.log %132 : vector<32x128xf32>
    %139 = arith.addf %31, %138 : vector<32x128xf32>
    %140 = arith.subf %139, %137 : vector<32x128xf32>
    %141 = arith.mulf %140, %97 : vector<32x128xf32>
    %cst_70 = arith.constant dense<0.000000e+00> : vector<32xf32>
    %142 = vector.multi_reduction <add>, %141, %cst_70 [1] : vector<32x128xf32> to vector<32xf32>
    %143 = vector.shape_cast %142 : vector<32xf32> to vector<32x1xf32>
    %cst_71 = arith.constant dense<0.000000e+00> : vector<1xf32>
    %144 = vector.multi_reduction <add>, %143, %cst_71 [0] : vector<32x1xf32> to vector<1xf32>
    %145 = vector.shape_cast %144 : vector<1xf32> to vector<1x1xf32>
    %146 = vector.shape_cast %145 : vector<1x1xf32> to vector<1x1x1xf32>
    %c0_72 = arith.constant 0 : index
    %c0_73 = arith.constant 0 : index
    %c0_74 = arith.constant 0 : index
    %147 = vector.load %arg3[%c0_72, %c0_73, %c0_74] : memref<1x1x1xf32, #tpu.memory_space<vmem>>, vector<1x1x1xf32>
    tpu.vector_store %arg3[%c0_72, %c0_73, %c0_74], %146 {strides = array<i32>} : memref<1x1x1xf32, #tpu.memory_space<vmem>>, vector<1x1x1xf32>,
    return
  }
  func.func @transform_0(%arg0: i32) -> (i32, i32, i32, i32) {
    %c0_i32 = arith.constant 0 : i32
    %c0_i32_0 = arith.constant 0 : i32
    %c0_i32_1 = arith.constant 0 : i32
    %c0_i32_2 = arith.constant 0 : i32
    return %arg0, %c0_i32, %c0_i32_0, %c0_i32_1 : i32, i32, i32, i32
  }
  func.func @transform_1(%arg0: i32) -> (i32, i32, i32, i32) {
    %c0_i32 = arith.constant 0 : i32
    %c0_i32_0 = arith.constant 0 : i32
    %c0_i32_1 = arith.constant 0 : i32
    %c0_i32_2 = arith.constant 0 : i32
    return %arg0, %c0_i32, %c0_i32_0, %c0_i32_1 : i32, i32, i32, i32
  }
  func.func @transform_2(%arg0: i32) -> (i32, i32, i32) {
    %c0_i32 = arith.constant 0 : i32
    %c0_i32_0 = arith.constant 0 : i32
    %c0_i32_1 = arith.constant 0 : i32
    return %arg0, %c0_i32, %c0_i32_0 : i32, i32, i32
  }
}

</mosaic_0001>

<bundles_post_ra>
// kernel: tpu_custom_call.1
= control target key start
LH: loop header
LB: loop body
LE: loop exit
PB: predicated region body
PF: predicated region fallthrough
CT: control target
= control target key end

     0   :  { %7 = vsyncpa [#allocation3], 0  ;;  %s1828_s0 = inlined_call_operand.hbm [shape: f32[2,4,32,128], index: 0, kind: input, shape index: {}]   ;;  %s1829_s1 = inlined_call_operand.hbm [shape: s8[2,1,32,128], index: 1, kind: input, shape index: {}]   ;;  %s1830_s2 = inlined_call_operand.vmem [shape: f32[2,1,1], index: 2, kind: output, shape index: {}]  }
   0x1   :  { %9 = vsyncpa [#allocation3 + $0x1], 0 }
   0x2   :  { %10 = vsyncpa [#allocation5], 0 }
   0x3   :  { %12 = vsyncpa [#allocation5 + $0x1], 0  ;;  %s1105_s9 = smov 0   ;;  %s1107_s10 = smov 0  }
   0x4   :  { %s1109_s11 = smov 0   ;;  %s1111_s12 = smov 0  }
   0x5 LB: > { %s1124_s13 = sadd.s32 4294967295, %s1080_s12   ;;  %s1127_s14 = sadd.s32 1, %s1080_s12   ;;  %s1080_s12 = sphi %s1111_s12, %s1914_s12   ;;  %s1076_s11 = sphi %s1109_s11, %s1913_s11   ;;  %s1072_s10 = sphi %s1107_s10, %s1912_s10   ;;  %s1068_s9 = sphi %s1105_s9, %s1911_s9  }
   0x6   : > { %s22_s15 = ssub.s32 %s1080_s12, %s1127_s14  ;;  %s25_s16 = sadd.s32 1, %s1076_s11 }
   0x7   : > { %p23_p0 = scmp.eq.s32.totalorder %s22_s15, 0  ;;  %p32_p1 = scmp.ne.s32.totalorder %s1076_s11, %s1072_s10 }
   0x8   : > { %p33_p2 = scmp.eq.s32.totalorder %s1080_s12, 0  ;;  %p38_p3 = scmp.ne.s32.totalorder %s1072_s10, %s1068_s9 }
   0x9   : > { %s1137_s17 = scalar_select %p23_p0, %s1076_s11, %s25_s16  }
   0xa   : > { %p1139_p4 = por %p33_p2, %p32_p1  ;;  %p39_p5 = scmp.eq.s32.totalorder %s1124_s13, 0 }
   0xb   : > { %p821_p6 = scmp.lt.s32.totalorder %s1080_s12, 2  ;;  %s1150_s20 = sand.u32 1, %s1076_s11  }
   0xc   : > { %p1145_p7 = por %p39_p5, %p38_p3  ;;  %s787_s21 = sshll.u32 %s1150_s20, 7 }
   0xd   : > { %s809_s22 = sshll.u32 %s1080_s12, 7  ;;  %s118_s26 = scalar_lea.vmem [#allocation2], %s787_s21 }
   0xe   : > { %s123_s25 = scalar_lea.hbm %s1828_s0, %s809_s22  ;;  %s126_s27 = sshll.u32 %s118_s26, 4  ;;  %s127_s27 = int_to_ptr.vmem [resolvable:$true] %s126_s27 }
   0xf   : > { %s124_s28 = sshll.u32 %s123_s25, 4  ;;  %p1159_p8 = pnand %p821_p6, %p1139_p4  ;;  %s125_s28 = int_to_ptr.hbm [resolvable:$true] %s124_s28 }
  0x10   : > { %p792_p9 = scmp.ge.s32.totalorder %s1080_s12, 1  ;;  %s115_s30 = scalar_lea.sflag [#allocation3], %s1150_s20 }
  0x11   : > { %s982_s3 = sshra.s32 %s125_s28, 4  ;;  %p986_p11 = pneg %p1159_p8  ;;  %s983_s3 = int_to_ptr.hbm [resolvable:$true] %s982_s3 }
  0x12   : > { %s984_s4 = scalar_lea.hbm %s983_s3, 128  ;;  %s989_s7 = scalar_lea.hbm %s1828_s0, 256 }
  0x13   : > { %p985_p10 = scmp.ne.s32.totalorder %s983_s3, %s984_s4  ;;  %p990_p0 = scmp.lt.s32.totalorder %s983_s3, %s1828_s0 }
  0x14   : > { %p991_p1 = scmp.lt.s32.totalorder %s989_s7, %s984_s4 }
  0x15   : > { %p987_p12 = pnand %p986_p11, %p985_p10 }
  0x16   : > { %p992_p2 = por %p991_p1, %p990_p0 }
  0x17   : > { %p988_p13 = pneg %p987_p12 }
  0x19   : > { %p993_p3 = pnand %p992_p2, %p988_p13 }
  0x1b   : > { %996 = shalt.err (!%p993_p3)
}
  0x1c   : > { %s1082_s15 = smov 128   ;;  %s1083_s16 = smov 8  }
  0x1d   : > { %817 = dma.hbm_to_vmem [thread:$0]  (!%p1159_p8), %s125_s28, 2048, %s127_s27, %s115_s30, %s1082_s15, %s1082_s15, %s1083_s16  }
  0x1e   : > { %p153_p4 = scmp.lt.s32.totalorder %s1080_s12, 3  ;;  %s790_s18 = sshll.u32 %s1150_s20, 3 }
  0x1f   : > { %s791_s21 = sshll.u32 %s1080_s12, 3  ;;  %s140_s26 = scalar_lea.vmem [#allocation4], %s790_s18 }
  0x20   : > { %p1183_p5 = pnand %p792_p9, %p153_p4  ;;  %s144_s25 = scalar_lea.hbm %s1829_s1, %s791_s21 }
  0x21   : > { %s148_s3 = sshll.u32 %s140_s26, 4  ;;  %s146_s4 = sshll.u32 %s144_s25, 4  ;;  %s149_s3 = int_to_ptr.vmem [resolvable:$true] %s148_s3  ;;  %s147_s4 = int_to_ptr.hbm [resolvable:$true] %s146_s4 }
  0x22   : > { %s137_s5 = scalar_lea.sflag [#allocation5], %s1150_s20  ;;  %s1012_s27 = sshra.s32 %s147_s4, 4  ;;  %s1013_s27 = int_to_ptr.hbm [resolvable:$true] %s1012_s27 }
  0x23   : > { %s1014_s28 = scalar_lea.hbm %s1013_s27, 8  ;;  %s1019_s6 = scalar_lea.hbm %s1829_s1, 16 }
  0x24   : > { %p1015_p6 = scmp.ne.s32.totalorder %s1013_s27, %s1014_s28  ;;  %p1020_p12 = scmp.lt.s32.totalorder %s1013_s27, %s1829_s1 }
  0x25   : > { %p1021_p13 = scmp.lt.s32.totalorder %s1019_s6, %s1014_s28 }
  0x26   : > { %p1017_p9 = pnand %p1015_p6, %p986_p11 }
  0x27   : > { %p1022_p0 = por %p1021_p13, %p1020_p12 }
  0x28   : > { %p1018_p10 = pneg %p1017_p9 }
  0x2a   : > { %p1023_p1 = pnand %p1022_p0, %p1018_p10 }
  0x2c   : > { %1026 = shalt.err (!%p1023_p1)
}
  0x2d   : > { %820 = dma.hbm_to_vmem [thread:$0]  (!%p1159_p8), %s147_s4, 128, %s149_s3, %s137_s5  }
  0x2e   : > { %157 = sbr.rel (%p1183_p5) target bundleno = 380 (0x17c), region = 28 }
  0x33   : > { %s159_s20 = sand.u32 1, %s1072_s10  }
  0x34   : > { %s793_s9 = sshll.u32 %s159_s20, 7  ;;  %s160_s15 = scalar_lea.sflag [#allocation3], %s159_s20 }
  0x35   : > { %s1205_s16 = scalar_lea.vmem [#allocation2], %s793_s9 }
  0x36   : > { %1059 = dma.done.wait (%p1145_p7), %s160_s15, 2048  }
  0x37   : > { %1061 = vsyncadd (%p1145_p7), %s160_s15, 4294965248  ;;  %s794_s18 = sshll.u32 %s159_s20, 3  ;;  %s170_s21 = scalar_lea.sflag [#allocation5], %s159_s20 }
  0x38   : > { %s1211_s29 = scalar_lea.vmem [#allocation4], %s794_s18 }
  0x39   : > { %1063 = dma.done.wait (%p1145_p7), %s170_s21, 128  }
  0x3a   : > { %1065 = vsyncadd (%p1145_p7), %s170_s21, 4294967168  ;;  %v206_v0 = vlaneseq  ;;  %v1219_v2 = vld [vmem:[%s1205_s16 + $0x10] sm:$0xff]  ;;  %v1230_v5 = vld [vmem:[%s1205_s16] sm:$0xff]  ;;  %v1084_v7 = vmov 0   ;;  %v1831_v31 = vmov 0.0   ;;  %s1086_s19 = smov 1  }
  0x3b   : > { %v1222_v3 = vld [vmem:[%s1205_s16 + $0x30] sm:$0xff]  ;;  %v1233_v6 = vld [vmem:[%s1205_s16 + $0x8] sm:$0xff]  ;;  %v1241_v11 = vld [vmem:[%s1205_s16 + $0x20] sm:$0xff]  ;;  %s1088_s22 = smov 127   ;;  %v1089_v54 = vmov 1.0   ;;  %p198_p7 = scmp.lt.s32.totalorder %s1124_s13, 1 }
  0x3c   : > { %v212_v1 = vand.u32 127, %v206_v0  ;;  %v1225_v4 = vld [vmem:[%s1205_s16 + $0x50] sm:$0xff]  ;;  %vm233_vm0 = vcmp.gt.f32.partialorder %v1222_v3, %v1219_v2  ;;  %v1244_v12 = vld [vmem:[%s1205_s16 + $0x28] sm:$0xff]  ;;  %vm231_vm3 = vcmp.gt.f32.partialorder %v1241_v11, %v1230_v5  ;;  %v1252_v13 = vld [vmem:[%s1205_s16 + $0x40] sm:$0xff] }
  0x3d   : > { %1859 = vst [vmem:[#allocation8_spill] sm:$0xff] %v1225_v4  ;;  %v237_v8 = vsel %vm233_vm0, 1, %v1084_v7  ;;  %v241_v9 = vsel %vm233_vm0, %v1222_v3, %v1219_v2  ;;  %v1238_v10 = vld [vmem:[%s1205_s16 + $0x70] sm:$0xff]  ;;  %vm232_vm4 = vcmp.gt.f32.partialorder %v1244_v12, %v1233_v6  ;;  %v1255_v14 = vld [vmem:[%s1205_s16 + $0x48] sm:$0xff]  ;;  %v235_v17 = vsel %vm231_vm3, 1, %v1084_v7  ;;  %v1261_v19 = vld [vmem:[%s1205_s16 + $0x18] sm:$0xff] }
  0x3e   : > { %vm250_vm1 = vcmp.gt.f32.partialorder %v1225_v4, %v241_v9  ;;  %vm217_vm2 = vcmp.lt.s32.totalorder %v212_v1, 16  ;;  %v236_v18 = vsel %vm232_vm4, 1, %v1084_v7  ;;  %1860 = vst [vmem:[#allocation9_spill] sm:$0xff] %v1261_v19  ;;  %v1264_v20 = vld [vmem:[%s1205_s16 + $0x38] sm:$0xff]  ;;  %v239_v21 = vsel %vm231_vm3, %v1241_v11, %v1230_v5  ;;  %v1273_v23 = vld [vmem:[%s1205_s16 + $0x60] sm:$0xff]  ;;  %v1285_v25 = vld [vmem:[%s1205_s16 + $0x68] sm:$0xff] }
  0x3f   : > { %v254_v15 = vsel %vm250_vm1, 2, %v237_v8  ;;  %v1258_v16 = vsel %vm250_vm1, %v1225_v4, %v241_v9  ;;  %1861 = vst [vmem:[#allocation10_spill] sm:$0xff] %v1264_v20  ;;  %v240_v22 = vsel %vm232_vm4, %v1244_v12, %v1233_v6  ;;  %vm234_vm6 = vcmp.gt.f32.partialorder %v1264_v20, %v1261_v19  ;;  %v1288_v27 = vld [vmem:[%s1205_s16 + $0x58] sm:$0xff]  ;;  %s1916_s13 = smov (!%p198_p7, %s1124_s13), 1 }
  0x40   : > { %vm267_vm5 = vcmp.gt.f32.partialorder %v1238_v10, %v1258_v16  ;;  %vm248_vm7 = vcmp.gt.f32.partialorder %v1252_v13, %v239_v21  ;;  %vm249_vm8 = vcmp.gt.f32.partialorder %v1255_v14, %v240_v22  ;;  %v238_v26 = vsel %vm234_vm6, 1, %v1084_v7  ;;  %1862 = vst [vmem:[#allocation11_spill] sm:$0xff] %v1288_v27  ;;  %v1311_v36 = vld [vmem:[%s1205_s16 + $0x78] sm:$0xff]  ;;  %s200_s25 = scalar_lea.vmem %s1830_s2, %s1916_s13 }
  0x41   : > { %v1280_v24 = vsel %vm267_vm5, 3, %v254_v15  ;;  %v252_v28 = vsel %vm248_vm7, 2, %v235_v17  ;;  %v253_v29 = vsel %vm249_vm8, 2, %v236_v18  ;;  %v1292_v30 = vsel %vm248_vm7, %v1252_v13, %v239_v21  ;;  %1863 = vst [vmem:[#allocation12_spill] sm:$0xff] %v1311_v36 }
  0x42   : > { %vm279_vm9 = vcmp.eq.s32.totalorder %v1280_v24, 1  ;;  %v1298_v33 = vsel %vm249_vm8, %v1255_v14, %v240_v22  ;;  %vm265_vm10 = vcmp.gt.f32.partialorder %v1273_v23, %v1292_v30  ;;  %v242_v34 = vsel %vm234_vm6, %v1264_v20, %v1261_v19 }
  0x43   : > { %v1295_v32 = vsel %vm279_vm9, 1.0, %v1831_v31  ;;  %vm266_vm11 = vcmp.gt.f32.partialorder %v1285_v25, %v1298_v33  ;;  %v269_v35 = vsel %vm265_vm10, 3, %v252_v28  ;;  %vm251_vm12 = vcmp.gt.f32.partialorder %v1288_v27, %v242_v34 }
  0x44   : > { %v270_v37 = vsel %vm266_vm11, 3, %v253_v29  ;;  %vm277_vm13 = vcmp.eq.s32.totalorder %v269_v35, 1  ;;  %v255_v38 = vsel %vm251_vm12, 2, %v238_v26  ;;  %868 = vrot.lane.b32.xlu1 %v1295_v32, %s1086_s19  ;;  %v1322_v40 = vsel %vm251_vm12, %v1288_v27, %v242_v34 }
  0x45   : > { %vm278_vm14 = vcmp.eq.s32.totalorder %v270_v37, 1  ;;  %v1319_v39 = vsel %vm277_vm13, 1.0, %v1831_v31  ;;  %vm281_vm15 = vcmp.eq.s32.totalorder %v269_v35, 2  ;;  %vm1087_vm0 = vmmov 1  }
  0x46   : > { %1864 = vst [vmem:[#allocation13_spill] sm:$0xff] %v1319_v39  ;;  %v1325_v41 = vsel %vm278_vm14, 1.0, %v1831_v31  ;;  %vm1328_vm1 = vmxor %vm217_vm2, %vm1087_vm0  ;;  %vm268_vm3 = vcmp.gt.f32.partialorder %v1311_v36, %v1322_v40  ;;  %vm282_vm4 = vcmp.eq.s32.totalorder %v270_v37, 2  ;;  %vm285_vm8 = vcmp.eq.s32.totalorder %v269_v35, 3 }
  0x47   : > { %1865 = vst [vmem:[#allocation14_spill] sm:$0xff] %v1325_v41  ;;  %vm1334_vm6 = vmor %vm281_vm15, %vm277_vm13  ;;  %v862_v44 = vpack.i.bf16 %v1325_v41, %v1319_v39  ;;  %v272_v45 = vsel %vm268_vm3, 3, %v255_v38  ;;  %vm286_vm9 = vcmp.eq.s32.totalorder %v270_v37, 3  ;;  %v1352_v48 = vsel %vm281_vm15, 1.0, %v1831_v31 }
  0x48   : > { %vm1343_vm7 = vmor %vm282_vm4, %vm278_vm14  ;;  %vm280_vm2 = vcmp.eq.s32.totalorder %v272_v45, 1  ;;  %v1360_v49 = vsel %vm282_vm4, 1.0, %v1831_v31  ;;  %v1363_v50 = vsel %vm285_vm8, 1.0, %v1831_v31  ;;  %v1366_v51 = vsel %vm286_vm9, 1.0, %v1831_v31 }
  0x49   : > { %863 = vrot.lane.b32.xlu0 %v862_v44, %s1086_s19  ;;  %v1349_v47 = vsel %vm280_vm2, 1.0, %v1831_v31  ;;  %873 = vrot.lane.b32.xlu2 %v862_v44, %s1088_s22  ;;  %vm301_vm12 = vmor %vm1334_vm6, %vm1328_vm1  ;;  %1873 = vst [vmem:[#allocation16_spill] sm:$0xff] %v1360_v49  ;;  %v882_v52 = vpack.i.bf16 %v1360_v49, %v1352_v48  ;;  %v877_v53 = vpack.i.bf16 %v1366_v51, %v1363_v50  ;;  %vm283_vm14 = vcmp.eq.s32.totalorder %v1280_v24, 2 }
  0x4a   : > { %1872 = vst [vmem:[#allocation15_spill] sm:$0xff] %v1349_v47  ;;  %vm302_vm13 = vmor %vm1343_vm7, %vm1328_vm1  ;;  %v1378_v55 = vsel %vm301_vm12, 0.0, %v1089_v54  ;;  %vm287_vm15 = vcmp.eq.s32.totalorder %v1280_v24, 3  ;;  %v1393_v58 = vsel %vm283_vm14, 1.0, %v1831_v31  ;;  %vm284_vm0 = vcmp.eq.s32.totalorder %v272_v45, 2 }
  0x4b   : > { %1874 = vst [vmem:[#allocation17_spill] sm:$0xff] %v1366_v51  ;;  %v1380_v56 = vsel %vm302_vm13, 0.0, %v1089_v54  ;;  %v1396_v59 = vsel %vm287_vm15, 1.0, %v1831_v31  ;;  %vm288_vm1 = vcmp.eq.s32.totalorder %v272_v45, 3  ;;  %v1402_v61 = vsel %vm284_vm0, 1.0, %v1831_v31 }
  0x4c   : > { %888 = vrot.lane.b32.xlu1 %v1349_v47, %s1086_s19  ;;  %v907_v57 = vpack.i.bf16 %v1380_v56, %v1378_v55  ;;  %v902_v60 = vpack.i.bf16 %v1393_v58, %v1396_v59  ;;  %v1405_v62 = vsel %vm288_vm1, 1.0, %v1831_v31  ;;  %v1417_v1 = vshrl.u32 %v206_v0, 7 }
  0x4d   : > { %v927_v63 = vpack.i.bf16 %v1402_v61, %v1405_v62  ;;  %v431_v7 = vrot.slane %v1363_v50, 7  ;;  %v1838_v8 = vrot.slane %v1366_v51, 7  ;;  %v1834_v9 = vrot.slane %v1405_v62, 7 }
  0x4e   : > { %vm313_vm4 = vcmp.lt.s32.totalorder %v1417_v1, 1  ;;  %v364_v15 = vrot.slane %v1325_v41, 7  ;;  %v366_v17 = vrot.slane %v1349_v47, 7  ;;  %v363_v18 = vrot.slane %v1319_v39, 7 }
  0x4f   : > { %v1833_v21 = vrot.slane %v1363_v50, 1  ;;  %v444_v22 = vrot.slane %v1366_v51, 1  ;;  %v1835_v0 = vrot.slane %v1396_v59, 1  ;;  %v365_v24 = vrot.slane %v1295_v32, 7 }
  0x50   : > { %vm326_vm6 = vcmp.lt.s32.totalorder %v1417_v1, 7  ;;  %v437_v26 = vsel %vm313_vm4, %v431_v7, %v1838_v8  ;;  %v438_v28 = vsel %vm313_vm4, %v1834_v9, %v431_v7  ;;  %v1440_v29 = vrot.slane %v1831_v31, 7 }
  0x51   : > { %883 = vrot.lane.b32.xlu0 %v882_v52, %s1086_s19  ;;  %878 = vrot.lane.b32.xlu2 %v877_v53, %s1086_s19  ;;  %v378_v34 = vrot.slane %v1349_v47, 1  ;;  %v310_v35 = vrot.slane %v1380_v56, 7  ;;  %v377_v37 = vrot.slane %v1295_v32, 1  ;;  %v376_v38 = vrot.slane %v1325_v41, 1 }
  0x52   : > { %v368_v42 = vsel %vm313_vm4, %v364_v15, %v365_v24  ;;  %v369_v43 = vsel %vm313_vm4, %v363_v18, %v364_v15  ;;  %v370_v44 = vsel %vm313_vm4, %v366_v17, %v363_v18  ;;  %v375_v45 = vrot.slane %v1319_v39, 1 }
  0x53   : > { %v439_v46 = vadd.f32 %v438_v28, %v1363_v50  ;;  %v449_v54 = vsel %vm326_vm6, %v1833_v21, %v444_v22  ;;  %v1836_v7 = vrot.slane %v1402_v61, 7  ;;  %v315_v15 = vsel %vm313_vm4, %v310_v35, %v1440_v29 }
  0x54   : > { %908 = vrot.lane.b32.xlu1 %v907_v57, %s1088_s22  ;;  %v373_v18 = vadd.f32 %v368_v42, %v1295_v32  ;;  %v372_v28 = vadd.f32 %v369_v43, %v1325_v41  ;;  %v381_v21 = vsel %vm326_vm6, %v375_v45, %v376_v38  ;;  %v382_v8 = vsel %vm326_vm6, %v378_v34, %v375_v45 }
  0x55   : > { %v1481_v9 = vadd.f32 %v449_v54, %v439_v46  ;;  %v1876_v27 = vrot.slane %v1352_v48, 1 }
  0x59   : > { %898 = vrot.lane.b32.xlu0 %v907_v57, %s1086_s19  ;;  %893 = vrot.lane.b32.xlu2 %v1295_v32, %s1088_s22  ;;  %v1464_v57 = vrot.slane %v1831_v31, 1  ;;  %v380_v31 = vsel %vm326_vm6, %v376_v38, %v377_v37  ;;  %v1503_v38 = vsel %vm266_vm11, %v1285_v25, %v1298_v33 }
  0x5b   : > { %v1492_v43 = vadd.f32 %v1464_v57, %v315_v15  ;;  %v322_v15 = vrot.slane %v1378_v55, 1 }
  0x5c   : > { %913 = vrot.lane.b32.xlu1 %v877_v53, %s1088_s22  ;;  %v448_v53 = vsel %vm326_vm6, %v444_v22, %v1835_v0  ;;  %v379_v22 = vsel %vm326_vm6, %v377_v37, %v378_v34 }
  0x5d   : > { %v1505_v46 = vadd.f32 %v379_v22, %v373_v18  ;;  %v636_v22 = vsub.f32 %v1285_v25, %v1503_v38 }
  0x5f   : > { %v641_v34 = vmul.f32 1.442695, %v636_v22 }
  0x61   : > { %903 = vrot.lane.b32.xlu0 %v902_v60, %s1086_s19  ;;  %918 = vrot.lane.b32.xlu2 %v882_v52, %s1088_s22  ;;  %v440_v52 = vadd.f32 %v437_v26, %v1366_v51  ;;  %v371_v26 = vadd.f32 %v370_v44, %v1319_v39 }
  0x63   : > { %v1489_v44 = vadd.f32 %v448_v53, %v440_v52  ;;  %v1507_v54 = vadd.f32 %v381_v21, %v371_v26  ;;  %v1509_v52 = vadd.f32 %v380_v31, %v372_v28  ;;  %v580_v21 = vsub.f32 %v1244_v12, %v1503_v38 }
  0x64   : > { %928 = vrot.lane.b32.xlu1 %v927_v63, %s1086_s19  ;;  %v608_v31 = vsub.f32 %v1255_v14, %v1503_v38  ;;  %v309_v26 = vrot.slane %v1378_v55, 7 }
  0x65   : > { %v585_v18 = vmul.f32 1.442695, %v580_v21 }
  0x66   : > { %v613_v53 = vmul.f32 1.442695, %v608_v31 }
  0x69   : > { %923 = vrot.lane.b32.xlu0 %v1349_v47, %s1088_s22  ;;  %933 = vrot.lane.b32.xlu2 %v902_v60, %s1088_s22  ;;  %v483_v60 = vrot.slane %v1352_v48, 7 }
  0x6b   : > { %v490_v42 = vsel %vm313_vm4, %v1836_v7, %v483_v60 }
  0x6c   : > { %v491_v7 = vadd.f32 %v490_v42, %v1352_v48  ;;  %v1531_v42 = vsel %vm265_vm10, %v1273_v23, %v1292_v30 }
  0x6d   : > { %1875 = vst [vmem:[#allocation18_spill] sm:$0xff] %v1531_v42  ;;  %v551_v30 = vsub.f32 %v1230_v5, %v1531_v42 }
  0x6f   : > { %v555_v19 = vmul.f32 1.442695, %v551_v30 }
  0x71   : > { %938 = vrot.lane.b32.xlu0 %v927_v63, %s1088_s22  ;;  %v1837_v63 = vrot.slane %v1360_v49, 7 }
  0x73   : > { %v489_v37 = vsel %vm313_vm4, %v483_v60, %v1837_v63  ;;  %v496_v60 = vrot.slane %v1360_v49, 1  ;;  %v552_v63 = vsub.f32 %v1233_v6, %v1503_v38 }
  0x74   : > { %v492_v33 = vadd.f32 %v489_v37, %v1360_v49  ;;  %v367_v37 = vsel %vm313_vm4, %v365_v24, %v366_v17  ;;  %v317_v17 = vsel %vm313_vm4, %v1440_v29, %v309_v26  ;;  %v323_v24 = vrot.slane %v1380_v56, 1 }
  0x75   : > { %v557_v28 = vmul.f32 1.442695, %v552_v63  ;;  %v330_v63 = vsel %vm326_vm6, %v1464_v57, %v322_v15  ;;  %v501_v39 = vsel %vm326_vm6, %v1876_v27, %v496_v60  ;;  %v316_v27 = vsel %vm313_vm4, %v309_v26, %v310_v35 }
  0x76   : > { %v1559_v41 = vadd.f32 %v330_v63, %v1440_v29  ;;  %v374_v20 = vadd.f32 %v367_v37, %v1349_v47  ;;  %v1566_v45 = vadd.f32 %v501_v39, %v491_v7  ;;  %v318_v21 = vadd.f32 %v317_v17, %v1378_v55 }
  0x77   : > { %942 = vpow2.f32 %v557_v28  ;;  %v579_v28 = vsub.f32 %v1241_v11, %v1531_v42  ;;  %v607_v35 = vsub.f32 %v1252_v13, %v1531_v42  ;;  %v319_v29 = vadd.f32 %v316_v27, %v1380_v56 }
  0x78   : > { %944 = vpow2.f32 %v585_v18  ;;  %1877 = vst [vmem:[#allocation19_spill] sm:$0xff] %v1559_v41  ;;  %v1878_v18 = vrot.slane %v1393_v58, 1  ;;  %v329_v37 = vsel %vm326_vm6, %v322_v15, %v323_v24  ;;  %v328_v15 = vsel %vm326_vm6, %v323_v24, %v1464_v57 }
  0x79   : > { %946 = vpow2.f32 %v613_v53  ;;  %v583_v7 = vmul.f32 1.442695, %v579_v28  ;;  %v635_v53 = vsub.f32 %v1273_v23, %v1531_v42  ;;  %v611_v39 = vmul.f32 1.442695, %v607_v35  ;;  %v1615_v35 = vld [vmem:[%s1211_s29] sm:$0xff] }
  0x7a   : > { %v500_v22 = vsel %vm326_vm6, %v496_v60, %v1878_v18  ;;  %948 = vpow2.f32 %v641_v34  ;;  %v1847_v60 = vrot.slane %v1396_v59, 7  ;;  %v1580_v18 = vadd.f32 %v382_v8, %v374_v20 }
  0x7b   : > { %v1582_v27 = vadd.f32 %v500_v22, %v492_v33  ;;  %v1587_v34 = vadd.f32 %v329_v37, %v318_v21  ;;  %950 = vpow2.f32 %v555_v19  ;;  %v1594_v28 = vsel %vm267_vm5, %v1238_v10, %v1258_v16 }
  0x7c   : > { %v1879_v20 = vrot.slane %v1366_v51, 7  ;;  %v1880_v19 = vrot.slane %v1393_v58, 7  ;;  %v1881_v33 = vrot.slane %v1360_v49, 7  ;;  %v1612_v22 = vadd.f32 %v328_v15, %v319_v29 }
  0x7d   : > { %v943_v63 = vpop.eup %942  ;;  %952 = vpow2.f32 %v583_v7  ;;  %v639_v37 = vmul.f32 1.442695, %v635_v53  ;;  %v553_v47 = vsub.f32 %v1219_v2, %v1594_v28  ;;  %v1883_v15 = vrot.slane %v1405_v62, 1 }
  0x7e   : > { %v945_v30 = vpop.eup %944  ;;  %v436_v8 = vsel %vm313_vm4, %v1879_v20, %v1847_v60  ;;  %v488_v24 = vsel %vm313_vm4, %v1881_v33, %v1880_v19  ;;  %v581_v19 = vsub.f32 %v1222_v3, %v1594_v28  ;;  %v1884_v33 = vrot.slane %v1396_v59, 1 }
  0x7f   : > { %v592_v21 = vadd.f32 %v945_v30, %v943_v63  ;;  %v493_v29 = vadd.f32 %v488_v24, %v1393_v58  ;;  %v203_v63 = vunpack.c.1.s8 %v1615_v35  ;;  %954 = vpow2.f32 %v611_v39 }
  0x80   : > { %v447_v57 = vsel %vm326_vm6, %v1884_v33, %v1883_v15  ;;  %v1634_v24 = vunpack.c.0.s8 %v1615_v35  ;;  %v1886_v15 = vrot.slane %v1393_v58, 1  ;;  %956 = vpow2.f32 %v639_v37 }
  0x81   : > { %vm568_vm5 = vcmp.eq.s32.totalorder %v203_v63, 0  ;;  %vm596_vm10 = vcmp.eq.s32.totalorder %v203_v63, 1  ;;  %vm624_vm11 = vcmp.eq.s32.totalorder %v203_v63, 2  ;;  %vm652_vm7 = vcmp.eq.s32.totalorder %v203_v63, 3 }
  0x82   : > { %vm567_vm2 = vcmp.eq.s32.totalorder %v1634_v24, 0  ;;  %vm595_vm8 = vcmp.eq.s32.totalorder %v1634_v24, 1  ;;  %vm623_vm9 = vcmp.eq.s32.totalorder %v1634_v24, 2  ;;  %vm651_vm12 = vcmp.eq.s32.totalorder %v1634_v24, 3 }
  0x83   : > { %v1720_v1 = vunpack.c.2.s8 %v1615_v35 }
  0x85   : > { %vm569_vm13 = vcmp.eq.s32.totalorder %v1720_v1, 0  ;;  %vm597_vm14 = vcmp.eq.s32.totalorder %v1720_v1, 1  ;;  %vm625_vm15 = vcmp.eq.s32.totalorder %v1720_v1, 2 }
  0xa3   : > { %v1487_v0 = vpop.permute.xlu2 %873 }
  0xab   : > { %v1552_v31 = vpop.permute.xlu2 %878 }
  0xac   : > { %v881_v26 = vunpack.i.h.bf16 %v1552_v31  ;;  %v880_v17 = vunpack.i.l.bf16 %v1552_v31  ;;  %v947_v31 = vpop.eup %946 }
  0xad   : > { %v949_v20 = vpop.eup %948  ;;  %v620_v7 = vadd.f32 %v947_v31, %v592_v21  ;;  %v600_v21 = vsel %vm596_vm10, %v1244_v12, 0.0  ;;  %v628_v12 = vsel %vm624_vm11, %v1255_v14, 0.0 }
  0xae   : > { %v1610_v16 = vadd.f32 %v881_v26, %v1489_v44  ;;  %v609_v44 = vsub.f32 %v1225_v4, %v1594_v28  ;;  %v441_v26 = vadd.f32 %v436_v8, %v1396_v59  ;;  %v951_v41 = vpop.eup %950 }
  0xaf   : > { %v648_v8 = vadd.f32 %v949_v20, %v620_v7  ;;  %v953_v42 = vpop.eup %952  ;;  %v559_v20 = vmul.f32 1.442695, %v553_v47  ;;  %v1650_v47 = vadd.f32 %v880_v17, %v1481_v9 }
  0xb0   : > { %1882 = vst [vmem:[#allocation20_spill] sm:$0xff] %v1610_v16  ;;  %v1885_v16 = vrot.slane %v1402_v61, 1  ;;  %v955_v51 = vpop.eup %954 }
  0xb1   : > { %958 = vlog2.f32 %v648_v8 }
  0xb2   : > { %v499_v39 = vsel %vm326_vm6, %v1886_v15, %v1885_v16  ;;  %960 = vpow2.f32 %v559_v20 }
  0xb3   : > { %v894_v60 = vpop.permute.xlu2 %893 }
  0xb4   : > { %v896_v53 = vunpack.i.h.bf16 %v894_v60  ;;  %v895_v30 = vunpack.i.l.bf16 %v894_v60  ;;  %v572_v60 = vsel %vm568_vm5, %v1233_v6, 0.0 }
  0xb6   : > { %v869_v49 = vpop.permute.xlu1 %868 }
  0xb7   : > { %v871_v4 = vunpack.i.h.bf16 %v869_v49  ;;  %v870_v31 = vunpack.i.l.bf16 %v869_v49  ;;  %v604_v49 = vadd.f32 %v600_v21, %v572_v60  ;;  %v571_v60 = vsel %vm567_vm2, %v1230_v5, 0.0 }
  0xb8   : > { %v599_v21 = vsel %vm595_vm8, %v1241_v11, 0.0  ;;  %v637_v5 = vsub.f32 %v1238_v10, %v1594_v28  ;;  %vm700_vm2 = vcmask 0  }
  0xb9   : > { %v345_v7 = vadd.f32 %v870_v31, %v1492_v43  ;;  %v397_v33 = vadd.f32 %v871_v4, %v1505_v46  ;;  %v1652_v43 = vadd.f32 %v447_v57, %v441_v26  ;;  %v1654_v4 = vadd.f32 %v499_v39, %v493_v29 }
  0xba   : > { %v591_v46 = vadd.f32 %v953_v42, %v951_v41  ;;  %v632_v31 = vadd.f32 %v628_v12, %v604_v49  ;;  %v656_v41 = vsel %vm652_vm7, %v1285_v25, 0.0  ;;  %v615_v57 = vmul.f32 1.442695, %v609_v44 }
  0xbb   : > { %v864_v6 = vpop.permute.xlu0 %863  ;;  %v409_v15 = vadd.f32 %v896_v53, %v397_v33  ;;  %v357_v37 = vadd.f32 %v895_v30, %v345_v7  ;;  %v1657_v8 = vpop.permute.xlu2 %918  ;;  %v1887_v26 = vrot.slane %v1405_v62, 7  ;;  %v1890_v25 = vrot.slane %v1393_v58, 7 }
  0xbc   : > { %v866_v36 = vunpack.i.h.bf16 %v864_v6  ;;  %v865_v16 = vunpack.i.l.bf16 %v864_v6  ;;  %v957_v6 = vpop.eup %956  ;;  %v921_v11 = vunpack.i.h.bf16 %v1657_v8  ;;  %v619_v44 = vadd.f32 %v955_v51, %v591_v46 }
  0xbd   : > { %v413_v30 = vmul.f32 0.0, %v409_v15  ;;  %v361_v9 = vmul.f32 %v357_v37, %v1295_v32  ;;  %v959_v42 = vpop.eup %958  ;;  %v1891_v29 = vunpack.i.l.bf16 %v1487_v0  ;;  %v920_v39 = vunpack.i.l.bf16 %v1657_v8 }
  0xbe   : > { %v395_v14 = vadd.f32 %v865_v16, %v1507_v54  ;;  %v396_v53 = vadd.f32 %v866_v36, %v1509_v52  ;;  %v1663_v17 = vpop.permute.xlu1 %888  ;;  %v587_v54 = vmul.f32 1.442695, %v581_v19  ;;  %v1888_v36 = vrot.slane %v1396_v59, 7 }
  0xbf   : > { %v1889_v52 = vrot.slane %v1402_v61, 7  ;;  %v1685_v20 = vadd.f32 %v656_v41, %v632_v31  ;;  %v603_v7 = vadd.f32 %v599_v21, %v571_v60  ;;  %v1892_v33 = vunpack.i.h.bf16 %v1487_v0  ;;  %v961_v41 = vpop.eup %960 }
  0xc0   : > { %v435_v32 = vsel %vm313_vm4, %v1888_v36, %v1887_v26  ;;  %v407_v63 = vadd.f32 %v1891_v29, %v395_v14  ;;  %v1689_v12 = vadd.f32 %v413_v30, %v361_v9  ;;  %v666_v15 = vmul.f32 0.6931472, %v959_v42 }
  0xc1   : > { %v487_v19 = vsel %vm313_vm4, %v1890_v25, %v1889_v52  ;;  %v408_v49 = vadd.f32 %v1892_v33, %v396_v53  ;;  %v891_v37 = vunpack.i.h.bf16 %v1663_v17  ;;  %v442_v46 = vadd.f32 %v435_v32, %v1405_v62 }
  0xc2   : > { %v494_v14 = vadd.f32 %v487_v19, %v1402_v61  ;;  %v1893_v31 = vrot.slane %v1363_v50, 1  ;;  %v1894_v60 = vrot.slane %v1405_v62, 1  ;;  %v1895_v21 = vrot.slane %v1352_v48, 1 }
  0xc3   : > { %v884_v16 = vpop.permute.xlu0 %883  ;;  %v1896_v53 = vrot.slane %v1402_v61, 1  ;;  %v647_v9 = vadd.f32 %v957_v6, %v619_v44  ;;  %v1708_v42 = vmul.f32 %v407_v63, %v1378_v55  ;;  %v890_v26 = vunpack.i.l.bf16 %v1663_v17  ;;  %v1711_v36 = vpop.permute.xlu2 %933 }
  0xc4   : > { %v885_v51 = vunpack.i.l.bf16 %v884_v16  ;;  %v886_v8 = vunpack.i.h.bf16 %v884_v16  ;;  %v450_v0 = vsel %vm326_vm6, %v1894_v60, %v1893_v31  ;;  %v1714_v32 = vadd.f32 %v666_v15, %v1503_v38 }
  0xc5   : > { %v502_v30 = vsel %vm326_vm6, %v1896_v53, %v1895_v21  ;;  %v627_v52 = vsel %vm623_vm9, %v1252_v13, 0.0  ;;  %962 = vlog2.f32 %v647_v9  ;;  %v412_v55 = vmul.f32 %v408_v49, %v1380_v56 }
  0xc6   : > { %v515_v25 = vadd.f32 %v885_v51, %v1566_v45  ;;  %v909_v19 = vpop.permute.xlu1 %908  ;;  %v1724_v6 = vadd.f32 %v891_v37, %v1580_v18  ;;  %v1726_v44 = vadd.f32 %v450_v0, %v442_v46  ;;  %v1728_v38 = vadd.f32 %v502_v30, %v494_v14  ;;  %v1899_v30 = vld [vmem:[#allocation17_spill] sm:$0xff] }
  0xc7   : > { %v516_v13 = vadd.f32 %v886_v8, %v1582_v27  ;;  %v936_v45 = vunpack.i.h.bf16 %v1711_v36  ;;  %v631_v29 = vadd.f32 %v627_v52, %v603_v7  ;;  %964 = vpow2.f32 %v587_v54 }
  0xc8   : > { %v935_v24 = vunpack.i.l.bf16 %v1711_v36  ;;  %v676_v63 = vsub.f32 %v1714_v32, %v1685_v20  ;;  %v655_v56 = vsel %vm651_vm12, %v1273_v23, 0.0  ;;  %v527_v18 = vadd.f32 %v920_v39, %v515_v25  ;;  %v1900_v25 = vld [vmem:[#allocation10_spill] sm:$0xff] }
  0xc9   : > { %966 = vpow2.f32 %v615_v57  ;;  %v643_v49 = vmul.f32 1.442695, %v637_v5  ;;  %v911_v27 = vunpack.i.h.bf16 %v909_v19  ;;  %v910_v16 = vunpack.i.l.bf16 %v909_v19  ;;  %v1897_v57 = vld [vmem:[#allocation12_spill] sm:$0xff] }
  0xca   : > { %v528_v37 = vadd.f32 %v921_v11, %v516_v13  ;;  %v1738_v51 = vadd.f32 %v655_v56, %v631_v29  ;;  %v573_v46 = vsel %vm569_vm13, %v1219_v2, 0.0  ;;  %v601_v14 = vsel %vm597_vm14, %v1222_v3, 0.0  ;;  %v1898_v2 = vld [vmem:[#allocation9_spill] sm:$0xff] }
  0xcb   : > { %v899_v33 = vpop.permute.xlu0 %898  ;;  %v963_v54 = vpop.eup %962  ;;  %968 = vpow2.f32 %v643_v49  ;;  %v1749_v5 = vsel %vm268_vm3, %v1897_v57, %v1322_v40  ;;  %v531_v11 = vmul.f32 %v527_v18, %v1363_v50  ;;  %v605_v40 = vadd.f32 %v601_v14, %v573_v46  ;;  %v1901_v50 = vld [vmem:[#allocation14_spill] sm:$0xff]  ;;  %v1902_v29 = vld [vmem:[#allocation13_spill] sm:$0xff] }
  0xcc   : > { %v901_v15 = vunpack.i.h.bf16 %v899_v33  ;;  %v900_v7 = vunpack.i.l.bf16 %v899_v33  ;;  %v664_v60 = vmul.f32 0.6931472, %v963_v54  ;;  %v532_v9 = vmul.f32 %v528_v37, %v1899_v30  ;;  %v1903_v33 = vld [vmem:[#allocation20_spill] sm:$0xff] }
  0xcd   : > { %v965_v8 = vpop.eup %964  ;;  %v582_v19 = vsub.f32 %v1900_v25, %v1749_v5  ;;  %vm653_vm3 = vcmp.eq.s32.totalorder %v1720_v1, 3 }
  0xce   : > { %v344_v23 = vadd.f32 %v901_v15, %v1612_v22  ;;  %v343_v39 = vadd.f32 %v900_v7, %v1587_v34  ;;  %v914_v31 = vpop.permute.xlu1 %913  ;;  %v554_v22 = vsub.f32 %v1898_v2, %v1749_v5  ;;  %v593_v52 = vadd.f32 %v965_v8, %v961_v41  ;;  %v1904_v15 = vld [vmem:[#allocation18_spill] sm:$0xff] }
  0xcf   : > { %v916_v3 = vunpack.i.h.bf16 %v914_v31  ;;  %v915_v21 = vunpack.i.l.bf16 %v914_v31  ;;  %v967_v53 = vpop.eup %966  ;;  %v671_v7 = vadd.f32 %v664_v60, %v1904_v15  ;;  %v657_v36 = vsel %vm653_vm3, %v1238_v10, 0.0 }
  0xd0   : > { %v356_v34 = vadd.f32 %v911_v27, %v344_v23  ;;  %v355_v0 = vadd.f32 %v910_v16, %v343_v39  ;;  %v621_v54 = vadd.f32 %v967_v53, %v593_v52  ;;  %v1905_v23 = vld [vmem:[#allocation8_spill] sm:$0xff]  ;;  %v561_v37 = vmul.f32 1.442695, %v554_v22 }
  0xd1   : > { %v475_v18 = vadd.f32 %v915_v21, %v1650_v47  ;;  %v476_v49 = vadd.f32 %v916_v3, %v1903_v33  ;;  %v969_v27 = vpop.eup %968  ;;  %v629_v41 = vsel %vm625_vm15, %v1905_v23, 0.0  ;;  %v1906_v39 = vld [vmem:[#allocation16_spill] sm:$0xff]  ;;  %v589_v3 = vmul.f32 1.442695, %v582_v19  ;;  %v1909_v23 = vld [vmem:[#allocation19_spill] sm:$0xff] }
  0xd2   : > { %v360_v13 = vmul.f32 %v356_v34, %v1901_v50  ;;  %v359_v56 = vmul.f32 %v355_v0, %v1902_v29  ;;  %v649_v0 = vadd.f32 %v969_v27, %v621_v54  ;;  %v421_v29 = vmax.f32 %v1689_v12, 0.0 }
  0xd3   : > { %v904_v16 = vpop.permute.xlu0 %903  ;;  %v479_v46 = vmul.f32 %v475_v18, %v1352_v48  ;;  %v480_v14 = vmul.f32 %v476_v49, %v1906_v39  ;;  %v1908_v33 = vmov 0.0  }
  0xd4   : > { %v906_v8 = vunpack.i.h.bf16 %v904_v16  ;;  %v905_v31 = vunpack.i.l.bf16 %v904_v16  ;;  %v416_v34 = vadd.f32 %v412_v55, %v360_v13  ;;  %v415_v47 = vadd.f32 %v1708_v42, %v359_v56 }
  0xd5   : > { %v536_v53 = vadd.f32 %v532_v9, %v480_v14  ;;  %v535_v30 = vadd.f32 %v531_v11, %v479_v46  ;;  %970 = vlog2.f32 %v649_v0  ;;  %v675_v42 = vsub.f32 %v671_v7, %v1738_v51 }
  0xd6   : > { %v517_v21 = vadd.f32 %v906_v8, %v1654_v4  ;;  %v465_v60 = vadd.f32 %v905_v31, %v1652_v43  ;;  %v420_v52 = vmax.f32 %v416_v34, 0.0  ;;  %v419_v50 = vmax.f32 %v415_v47, 0.0  ;;  %v929_v22 = vpop.permute.xlu1 %928  ;;  %v1907_v43 = vld [vmem:[#allocation11_spill] sm:$0xff] }
  0xd7   : > { %972 = vpow2.f32 %v561_v37  ;;  %v610_v11 = vsub.f32 %v1907_v43, %v1749_v5  ;;  %v931_v18 = vunpack.i.h.bf16 %v929_v22  ;;  %v930_v7 = vunpack.i.l.bf16 %v929_v22 }
  0xd8   : > { %v477_v48 = vadd.f32 %v935_v24, %v465_v60  ;;  %v529_v55 = vadd.f32 %v936_v45, %v517_v21  ;;  %v540_v4 = vmax.f32 %v420_v52, %v536_v53  ;;  %v539_v19 = vmax.f32 %v419_v50, %v535_v30 }
  0xd9   : > { %974 = vpow2.f32 %v589_v3  ;;  %v633_v24 = vadd.f32 %v629_v41, %v605_v40  ;;  %v617_v45 = vmul.f32 1.442695, %v610_v11  ;;  %v346_v41 = vadd.f32 %v890_v26, %v1909_v23 }
  0xda   : > { %v481_v9 = vmul.f32 %v477_v48, %v1393_v58  ;;  %v533_v13 = vmul.f32 %v529_v55, %v1396_v59  ;;  %vm544_vm0 = vcmp.ge.f32.partialorder %v540_v4, 1.0  ;;  %vm543_vm1 = vcmp.ge.f32.partialorder %v539_v19, 1.0 }
  0xdb   : > { %v924_v56 = vpop.permute.xlu0 %923  ;;  %v548_v49 = vsel %vm544_vm0, 1.0, %v1908_v33  ;;  %v547_v27 = vsel %vm543_vm1, 1.0, %v1908_v33  ;;  %v971_v58 = vpop.eup %970  ;;  %v661_v54 = vadd.f32 %v657_v36, %v633_v24  ;;  %976 = vpow2.f32 %v617_v45 }
  0xdc   : > { %v926_v51 = vunpack.i.h.bf16 %v924_v56  ;;  %v925_v16 = vunpack.i.l.bf16 %v924_v56  ;;  %v680_v59 = vmul.f32 %v676_v63, %v548_v49  ;;  %v679_v12 = vmul.f32 %v675_v42, %v547_v27 }
  0xdd   : > { %v537_v40 = vadd.f32 %v533_v13, %v481_v9  ;;  %v973_v15 = vpop.eup %972  ;;  %v668_v1 = vmul.f32 0.6931472, %v971_v58  ;;  %v638_v46 = vsub.f32 %v1897_v57, %v1749_v5  ;;  %v518_v20 = vadd.f32 %v931_v18, %v1728_v38 }
  0xde   : > { %685 = vadd.xlane.f32.xlu2 %v680_v59  ;;  %683 = vadd.xlane.f32.xlu1 %v679_v12  ;;  %v205_v63 = vunpack.c.3.s8 %v1615_v35  ;;  %v358_v39 = vadd.f32 %v925_v16, %v346_v41  ;;  %v410_v14 = vadd.f32 %v926_v51, %v1724_v6  ;;  %v466_v17 = vadd.f32 %v930_v7, %v1726_v44 }
  0xdf   : > { %v975_v10 = vpop.eup %974  ;;  %v541_v37 = vmax.f32 %v421_v29, %v537_v40  ;;  %v673_v32 = vadd.f32 %v668_v1, %v1594_v28  ;;  %v645_v8 = vmul.f32 1.442695, %v638_v46  ;;  %v1910_v28 = vld [vmem:[#allocation15_spill] sm:$0xff] }
  0xe0   : > { %v594_v34 = vadd.f32 %v975_v10, %v973_v15  ;;  %v362_v60 = vmul.f32 %v358_v39, %v1910_v28  ;;  %v414_v35 = vmul.f32 0.0, %v410_v14  ;;  %vm570_vm6 = vcmp.eq.s32.totalorder %v205_v63, 0 }
  0xe1   : > { %vm545_vm4 = vcmp.ge.f32.partialorder %v541_v37, 1.0  ;;  %v677_v31 = vsub.f32 %v673_v32, %v661_v54  ;;  %978 = vpow2.f32 %v645_v8  ;;  %v977_v0 = vpop.eup %976  ;;  %vm598_vm5 = vcmp.eq.s32.totalorder %v205_v63, 1 }
  0xe2   : > { %v549_v26 = vsel %vm545_vm4, 1.0, %v1908_v33  ;;  %v622_v30 = vadd.f32 %v977_v0, %v594_v34  ;;  %v574_v50 = vsel %vm570_vm6, %v1898_v2, 0.0  ;;  %v602_v48 = vsel %vm598_vm5, %v1900_v25, 0.0 }
  0xe3   : > { %v939_v47 = vpop.permute.xlu0 %938  ;;  %v681_v21 = vmul.f32 %v677_v31, %v549_v26  ;;  %v418_v42 = vadd.f32 %v414_v35, %v362_v60  ;;  %vm626_vm10 = vcmp.eq.s32.totalorder %v205_v63, 2  ;;  %v606_v19 = vadd.f32 %v602_v48, %v574_v50 }
  0xe4   : > { %v941_v3 = vunpack.i.h.bf16 %v939_v47  ;;  %v940_v38 = vunpack.i.l.bf16 %v939_v47  ;;  %v630_v11 = vsel %vm626_vm10, %v1907_v43, 0.0  ;;  %vm654_vm11 = vcmp.eq.s32.totalorder %v205_v63, 3 }
  0xe5   : > { %687 = vadd.xlane.f32.xlu0 %v681_v21  ;;  %v422_v9 = vmax.f32 %v418_v42, 0.0  ;;  %v634_v29 = vadd.f32 %v630_v11, %v606_v19 }
  0xe6   : > { %v530_v6 = vadd.f32 %v941_v3, %v518_v20  ;;  %v478_v53 = vadd.f32 %v940_v38, %v466_v17 }
  0xe7   : > { %v979_v55 = vpop.eup %978 }
  0xe8   : > { %v534_v44 = vmul.f32 %v530_v6, %v1405_v62  ;;  %v482_v52 = vmul.f32 %v478_v53, %v1402_v61  ;;  %v650_v22 = vadd.f32 %v979_v55, %v622_v30  ;;  %v658_v62 = vsel %vm654_vm11, %v1897_v57, 0.0 }
  0xe9   : > { %v662_v2 = vadd.f32 %v658_v62, %v634_v29 }
  0xea   : > { %v538_v4 = vadd.f32 %v534_v44, %v482_v52  ;;  %980 = vlog2.f32 %v650_v22 }
  0xec   : > { %v542_v13 = vmax.f32 %v422_v9, %v538_v4 }
  0xee   : > { %vm546_vm7 = vcmp.ge.f32.partialorder %v542_v13, 1.0 }
  0xef   : > { %v550_v56 = vsel %vm546_vm7, 1.0, %v1908_v33 }
  0xf0   : > { %v981_v61 = vpop.eup %980 }
  0xf1   : > { %v670_v25 = vmul.f32 0.6931472, %v981_v61 }
  0xf3   : > { %v674_v24 = vadd.f32 %v670_v25, %v1749_v5 }
  0xf5   : > { %v678_v36 = vsub.f32 %v674_v24, %v662_v2 }
  0xf7   : > { %v682_v45 = vmul.f32 %v678_v36, %v550_v56 }
  0xf9   : > { %689 = vadd.xlane.f32.xlu2 %v682_v45 }
 0x151   : > { %v686_v43 = vpop.xlane.xlu2 %685  ;;  %v684_v51 = vpop.xlane.xlu1 %683 }
 0x152   : > { %v691_v18 = vadd.f32 %v686_v43, %v684_v51 }
 0x158   : > { %v688_v49 = vpop.xlane.xlu0 %687 }
 0x159   : > { %v692_v27 = vadd.f32 %v691_v18, %v688_v49 }
 0x16c   : > { %v690_v58 = vpop.xlane.xlu2 %689 }
 0x16d   : > { %v693_v57 = vadd.f32 %v692_v27, %v690_v58 }
 0x16f   : > { %v694_v16 = vrot.slane %v693_v57, 4 }
 0x171   : > { %v695_v59 = vadd.f32 %v694_v16, %v693_v57 }
 0x173   : > { %v696_v12 = vrot.slane %v695_v59, 2 }
 0x175   : > { %v697_v40 = vadd.f32 %v696_v12, %v695_v59 }
 0x177   : > { %v698_v5 = vrot.slane %v697_v40, 1 }
 0x179   : > { %v699_v33 = vadd.f32 %v698_v5, %v697_v40 }
 0x17b   : > { %701 = vst.msk [vmem:[%s200_s25] sm:$0x1] %vm700_vm2, %v699_v33 }
 0x17c PF: > { %p15_p8 = scmp.ge.s32.totalorder %s1127_s14, 4   ;;  %s1911_s9 = smov %s1072_s10 }
 0x17d   : > { %s1912_s10 = smov %s1076_s11  ;;  %s1913_s11 = smov %s1137_s17 }
 0x17e   : > { %s1914_s12 = smov %s1127_s14  ;;  %17 = sbr.rel (!%p15_p8) target bundleno = 5 (0x5), region = 84 }
 0x183   :  { %719 = vsyncpa [#allocation3], 1 }
 0x184   :  { %721 = vsyncpa [#allocation3 + $0x1], 1 }
 0x185   :  { %722 = vsyncpa [#allocation5], 1 }
 0x186   :  { %724 = vsyncpa [#allocation5 + $0x1], 1 }

</bundles_post_ra>
